<compile_context>
chip_gen: v6e
topology: v6e:2x2x1
jax: 0.10.0
libtpu: 0.0.40
codegen_flags: <defaults>
</compile_context>

<pallas_src>
import functools

import jax
import jax.numpy as jnp
from jax.experimental import pallas as pl
from jax.experimental.pallas import tpu as pltpu


def _qnetwork_kernel(n,
                     x_ref,
                     wf0_ref, bf0_ref,
                     wf1_ref, bf1_ref,
                     w1_ref, b1_ref,
                     w2_ref, b2_ref,
                     out_ref):
    # x_ref: (tb*n, D) -- already flattened host-side, no in-kernel relayout.
    x = x_ref[...]

    # ---- DQNFE feature extractor: two Linear+ReLU layers (one MXU push each) ----
    h = jnp.dot(x, wf0_ref[...], preferred_element_type=jnp.float32) + bf0_ref[...]
    h = jnp.maximum(h, 0.0)                                    # (tb*n, h0)

    h = jnp.dot(h, wf1_ref[...], preferred_element_type=jnp.float32) + bf1_ref[...]
    h = jnp.maximum(h, 0.0)                                    # (tb*n, h1)

    # ---- fc1 + ReLU ----
    h = jnp.dot(h, w1_ref[...], preferred_element_type=jnp.float32) + b1_ref[...]
    h = jnp.maximum(h, 0.0)                                    # (tb*n, h2)

    # ---- fc2 (output width 1): VPU multiply vs lane-major (1, h2) weight,
    # lane reduce on the 2-D activation; only the logits vector is reshaped.
    logits2d = jnp.sum(h * w2_ref[...], axis=-1, keepdims=True) + b2_ref[...]
    tb = x_ref.shape[0] // n
    logits = logits2d.reshape(tb, n)                           # (tb, n)

    # ---- softmax over candidate axis (dim=-1) ----
    m = jnp.max(logits, axis=-1, keepdims=True)
    e = jnp.exp(logits - m)
    denom = jnp.sum(e, axis=-1, keepdims=True)
    inv = pl.reciprocal(denom, approx=True)                    # EUP slot
    inv = inv * (2.0 - denom * inv)                            # Newton step -> ~f32 exact
    out_ref[...] = e * inv                                     # (tb, n)


def qnetwork_forward(x, params, *, tb=None):
    """x: (B, N, D) float32; params: tuple of 8 weight/bias arrays.

    Default is a single grid step (tb = B): at small batch the whole problem
    fits comfortably in VMEM (<100 KiB) and per-step overhead dominates.
    If tb is given it must divide B; batch tiling only pays once tb*N fills
    the MXU M dimension (128 rows on v5e, 256 on v6e/v7x).
    """
    B, N, D = x.shape
    if tb is None or tb >= B:
        tb = B
    assert B % tb == 0, "tb must divide B"
    steps = B // tb

    # Flatten candidates once on the host: free layout plumbing, makes the
    # MXU M dimension (tb*N rows) explicit and keeps relayouts out of the kernel.
    x2d = x.reshape(B * N, D)

    def resident(arr):
        # Whole-array block at a constant index: stays VMEM-resident,
        # not re-DMA'd per grid step.
        nd = arr.ndim
        return pl.BlockSpec(arr.shape, lambda i, _nd=nd: (0,) * _nd)

    in_specs = [pl.BlockSpec((tb * N, D), lambda i: (i, 0))]
    in_specs += [resident(p) for p in params]
    out_specs = pl.BlockSpec((tb, N), lambda i: (i, 0))

    # Megacore sharding only helps once each core gets several substantial
    # tiles; for tiny grids the fixed per-core overhead dominates.
    dim_sem = ("parallel",) if steps >= 4 else ("arbitrary",)

    return pl.pallas_call(
        functools.partial(_qnetwork_kernel, N),
        out_shape=jax.ShapeDtypeStruct((B, N), jnp.float32),
        grid=(steps,),
        in_specs=in_specs,
        out_specs=out_specs,
        compiler_params=pltpu.CompilerParams(
            dimension_semantics=dim_sem,
            vmem_limit_bytes=32 * 1024 * 1024,   # harmless; footprint is <100 KiB
        ),
    )(x2d, *params)


def init_params(key, obs_dim, hidden_dims):
    """Deterministic parameter init. Hidden-layer weights stored as (in, out)
    (already transposed vs. PyTorch's (out, in)); biases as (1, out).
    The fc2 weight is stored lane-major as (1, h2) so the width-1 output layer
    runs as a VPU broadcast-multiply + lane reduction (no column extract)."""
    h0, h1, h2 = hidden_dims
    keys = jax.random.split(key, 4)

    def linear(k, d_in, d_out):
        scale = 1.0 / jnp.sqrt(d_in)
        w = jax.random.uniform(k, (d_in, d_out), jnp.float32, -scale, scale)
        b = jax.random.uniform(jax.random.fold_in(k, 1), (1, d_out),
                               jnp.float32, -scale, scale)
        return w, b

    wf0, bf0 = linear(keys[0], obs_dim, h0)   # DQNFE layer 0
    wf1, bf1 = linear(keys[1], h0, h1)        # DQNFE layer 1
    w1, b1 = linear(keys[2], h1, h2)          # fc1
    w2_col, b2 = linear(keys[3], h2, 1)       # fc2
    w2_row = w2_col.T                          # (1, h2), lane-major
    return (wf0, bf0, wf1, bf1, w1, b1, w2_row, b2)


if __name__ == "__main__":
    B, N, D = 16, 8, 12           # batch, candidate actions, obs feature dim
    hidden_dims = [16, 16, 16]

    key = jax.random.PRNGKey(0)
    k_x, k_p = jax.random.split(key)
    x = jax.random.normal(k_x, (B, N, D), dtype=jnp.float32)
    params = init_params(k_p, D, hidden_dims)

    out = qnetwork_forward(x, params)          # single grid step at this size
    out = jax.block_until_ready(out)

    # Pure-JAX reference check.
    wf0, bf0, wf1, bf1, w1, b1, w2_row, b2 = params
    h = jnp.maximum(jnp.einsum('bnd,dh->bnh', x, wf0) + bf0, 0.0)
    h = jnp.maximum(jnp.einsum('bnd,dh->bnh', h, wf1) + bf1, 0.0)
    h = jnp.maximum(jnp.einsum('bnd,dh->bnh', h, w1) + b1, 0.0)
    logits = jnp.einsum('bnh,h->bn', h, w2_row[0]) + b2[0, 0]
    ref = jax.nn.softmax(logits, axis=-1)

    assert out.shape == (B, N)
    assert jnp.allclose(out, ref, atol=1e-4, rtol=1e-4), "mismatch vs reference"
    assert jnp.allclose(jnp.sum(out, axis=-1), 1.0, atol=1e-4)

    print("KERNEL_OK")
</pallas_src>

<mosaic_0001>
module attributes {stable_mosaic.version = 11 : i64} {
  func.func @_qnetwork_kernel(%arg0: i32, %arg1: memref<128x12xf32, #tpu.memory_space<vmem>>, %arg2: memref<12x16xf32, #tpu.memory_space<vmem>>, %arg3: memref<1x16xf32, #tpu.memory_space<vmem>>, %arg4: memref<16x16xf32, #tpu.memory_space<vmem>>, %arg5: memref<1x16xf32, #tpu.memory_space<vmem>>, %arg6: memref<16x16xf32, #tpu.memory_space<vmem>>, %arg7: memref<1x16xf32, #tpu.memory_space<vmem>>, %arg8: memref<1x16xf32, #tpu.memory_space<vmem>>, %arg9: memref<1x1xf32, #tpu.memory_space<vmem>>, %arg10: memref<16x8xf32, #tpu.memory_space<vmem>>) attributes {dimension_semantics = [#tpu.dimension_semantics<arbitrary>], iteration_bounds = array<i64: 1>, scalar_prefetch = 0 : i64, scratch_operands = 0 : i64, tpu.core_type = #tpu.core_type<tc>, window_params = [{transform_indices = @transform_0, window_bounds = array<i64: 128, 12>}, {pipeline_mode = #tpu.pipeline_mode<synchronous>, transform_indices = @transform_1, window_bounds = array<i64: 12, 16>}, {pipeline_mode = #tpu.pipeline_mode<synchronous>, transform_indices = @transform_2, window_bounds = array<i64: 1, 16>}, {pipeline_mode = #tpu.pipeline_mode<synchronous>, transform_indices = @transform_3, window_bounds = array<i64: 16, 16>}, {pipeline_mode = #tpu.pipeline_mode<synchronous>, transform_indices = @transform_4, window_bounds = array<i64: 1, 16>}, {pipeline_mode = #tpu.pipeline_mode<synchronous>, transform_indices = @transform_5, window_bounds = array<i64: 16, 16>}, {pipeline_mode = #tpu.pipeline_mode<synchronous>, transform_indices = @transform_6, window_bounds = array<i64: 1, 16>}, {pipeline_mode = #tpu.pipeline_mode<synchronous>, transform_indices = @transform_7, window_bounds = array<i64: 1, 16>}, {pipeline_mode = #tpu.pipeline_mode<synchronous>, transform_indices = @transform_8, window_bounds = array<i64: 1, 1>}, {transform_indices = @transform_9, window_bounds = array<i64: 16, 8>}]} {
    %c0 = arith.constant 0 : index
    %c0_0 = arith.constant 0 : index
    %0 = vector.load %arg1[%c0, %c0_0] : memref<128x12xf32, #tpu.memory_space<vmem>>, vector<128x12xf32>
    %c0_1 = arith.constant 0 : index
    %c0_2 = arith.constant 0 : index
    %1 = vector.load %arg2[%c0_1, %c0_2] : memref<12x16xf32, #tpu.memory_space<vmem>>, vector<12x16xf32>
    %cst = arith.constant dense<0.000000e+00> : vector<128x16xf32>
    %2 = tpu.matmul %0, %1, %cst {dimension_numbers = #tpu.dot_dimension_numbers<[1], [0], [0], [1], [0, 0, 1, 1], [], []>} : vector<128x12xf32>, vector<12x16xf32>, vector<128x16xf32> -> vector<128x16xf32>
    %c0_3 = arith.constant 0 : index
    %c0_4 = arith.constant 0 : index
    %3 = vector.load %arg3[%c0_3, %c0_4] : memref<1x16xf32, #tpu.memory_space<vmem>>, vector<1x16xf32>
    %4 = vector.broadcast %3 : vector<1x16xf32> to vector<128x16xf32>
    %5 = arith.addf %2, %4 : vector<128x16xf32>
    %cst_5 = arith.constant 0.000000e+00 : f32
    %6 = vector.broadcast %cst_5 : f32 to vector<128x16xf32>
    %7 = arith.maximumf %5, %6 : vector<128x16xf32>
    %c0_6 = arith.constant 0 : index
    %c0_7 = arith.constant 0 : index
    %8 = vector.load %arg4[%c0_6, %c0_7] : memref<16x16xf32, #tpu.memory_space<vmem>>, vector<16x16xf32>
    %cst_8 = arith.constant dense<0.000000e+00> : vector<128x16xf32>
    %9 = tpu.matmul %7, %8, %cst_8 {dimension_numbers = #tpu.dot_dimension_numbers<[1], [0], [0], [1], [0, 0, 1, 1], [], []>} : vector<128x16xf32>, vector<16x16xf32>, vector<128x16xf32> -> vector<128x16xf32>
    %c0_9 = arith.constant 0 : index
    %c0_10 = arith.constant 0 : index
    %10 = vector.load %arg5[%c0_9, %c0_10] : memref<1x16xf32, #tpu.memory_space<vmem>>, vector<1x16xf32>
    %11 = vector.broadcast %10 : vector<1x16xf32> to vector<128x16xf32>
    %12 = arith.addf %9, %11 : vector<128x16xf32>
    %cst_11 = arith.constant 0.000000e+00 : f32
    %13 = vector.broadcast %cst_11 : f32 to vector<128x16xf32>
    %14 = arith.maximumf %12, %13 : vector<128x16xf32>
    %c0_12 = arith.constant 0 : index
    %c0_13 = arith.constant 0 : index
    %15 = vector.load %arg6[%c0_12, %c0_13] : memref<16x16xf32, #tpu.memory_space<vmem>>, vector<16x16xf32>
    %cst_14 = arith.constant dense<0.000000e+00> : vector<128x16xf32>
    %16 = tpu.matmul %14, %15, %cst_14 {dimension_numbers = #tpu.dot_dimension_numbers<[1], [0], [0], [1], [0, 0, 1, 1], [], []>} : vector<128x16xf32>, vector<16x16xf32>, vector<128x16xf32> -> vector<128x16xf32>
    %c0_15 = arith.constant 0 : index
    %c0_16 = arith.constant 0 : index
    %17 = vector.load %arg7[%c0_15, %c0_16] : memref<1x16xf32, #tpu.memory_space<vmem>>, vector<1x16xf32>
    %18 = vector.broadcast %17 : vector<1x16xf32> to vector<128x16xf32>
    %19 = arith.addf %16, %18 : vector<128x16xf32>
    %cst_17 = arith.constant 0.000000e+00 : f32
    %20 = vector.broadcast %cst_17 : f32 to vector<128x16xf32>
    %21 = arith.maximumf %19, %20 : vector<128x16xf32>
    %c0_18 = arith.constant 0 : index
    %c0_19 = arith.constant 0 : index
    %22 = vector.load %arg8[%c0_18, %c0_19] : memref<1x16xf32, #tpu.memory_space<vmem>>, vector<1x16xf32>
    %23 = vector.broadcast %22 : vector<1x16xf32> to vector<128x16xf32>
    %24 = arith.mulf %21, %23 : vector<128x16xf32>
    %cst_20 = arith.constant dense<0.000000e+00> : vector<128xf32>
    %25 = vector.multi_reduction <add>, %24, %cst_20 [1] : vector<128x16xf32> to vector<128xf32>
    %26 = vector.shape_cast %25 : vector<128xf32> to vector<128x1xf32>
    %c0_21 = arith.constant 0 : index
    %c0_22 = arith.constant 0 : index
    %27 = vector.load %arg9[%c0_21, %c0_22] : memref<1x1xf32, #tpu.memory_space<vmem>>, vector<1x1xf32>
    %28 = vector.broadcast %27 : vector<1x1xf32> to vector<128x1xf32>
    %29 = arith.addf %26, %28 : vector<128x1xf32>
    %30 = vector.shape_cast %29 : vector<128x1xf32> to vector<16x8xf32>
    %cst_23 = arith.constant dense<0xFF800000> : vector<16xf32>
    %31 = vector.multi_reduction <maximumf>, %30, %cst_23 [1] : vector<16x8xf32> to vector<16xf32>
    %32 = vector.shape_cast %31 : vector<16xf32> to vector<16x1xf32>
    %33 = vector.broadcast %32 : vector<16x1xf32> to vector<16x8xf32>
    %34 = arith.subf %30, %33 : vector<16x8xf32>
    %35 = math.exp %34 : vector<16x8xf32>
    %cst_24 = arith.constant dense<0.000000e+00> : vector<16xf32>
    %36 = vector.multi_reduction <add>, %35, %cst_24 [1] : vector<16x8xf32> to vector<16xf32>
    %37 = vector.shape_cast %36 : vector<16xf32> to vector<16x1xf32>
    %38 = tpu.reciprocal %37 {approx = true} : vector<16x1xf32> -> vector<16x1xf32>
    %39 = arith.mulf %37, %38 : vector<16x1xf32>
    %cst_25 = arith.constant 2.000000e+00 : f32
    %40 = vector.broadcast %cst_25 : f32 to vector<16x1xf32>
    %41 = arith.subf %40, %39 : vector<16x1xf32>
    %42 = arith.mulf %38, %41 : vector<16x1xf32>
    %43 = vector.broadcast %42 : vector<16x1xf32> to vector<16x8xf32>
    %44 = arith.mulf %35, %43 : vector<16x8xf32>
    %c0_26 = arith.constant 0 : index
    %c0_27 = arith.constant 0 : index
    %45 = vector.load %arg10[%c0_26, %c0_27] : memref<16x8xf32, #tpu.memory_space<vmem>>, vector<16x8xf32>
    tpu.vector_store %arg10[%c0_26, %c0_27], %44 {strides = array<i32>} : memref<16x8xf32, #tpu.memory_space<vmem>>, vector<16x8xf32>,
    return
  }
  func.func @transform_0(%arg0: i32) -> (i32, i32) {
    %c0_i32 = arith.constant 0 : i32
    %c0_i32_0 = arith.constant 0 : i32
    return %arg0, %c0_i32 : i32, i32
  }
  func.func @transform_1(%arg0: i32) -> (i32, i32) {
    %c0_i32 = arith.constant 0 : i32
    %c0_i32_0 = arith.constant 0 : i32
    %c0_i32_1 = arith.constant 0 : i32
    return %c0_i32, %c0_i32_0 : i32, i32
  }
  func.func @transform_2(%arg0: i32) -> (i32, i32) {
    %c0_i32 = arith.constant 0 : i32
    %c0_i32_0 = arith.constant 0 : i32
    %c0_i32_1 = arith.constant 0 : i32
    return %c0_i32, %c0_i32_0 : i32, i32
  }
  func.func @transform_3(%arg0: i32) -> (i32, i32) {
    %c0_i32 = arith.constant 0 : i32
    %c0_i32_0 = arith.constant 0 : i32
    %c0_i32_1 = arith.constant 0 : i32
    return %c0_i32, %c0_i32_0 : i32, i32
  }
  func.func @transform_4(%arg0: i32) -> (i32, i32) {
    %c0_i32 = arith.constant 0 : i32
    %c0_i32_0 = arith.constant 0 : i32
    %c0_i32_1 = arith.constant 0 : i32
    return %c0_i32, %c0_i32_0 : i32, i32
  }
  func.func @transform_5(%arg0: i32) -> (i32, i32) {
    %c0_i32 = arith.constant 0 : i32
    %c0_i32_0 = arith.constant 0 : i32
    %c0_i32_1 = arith.constant 0 : i32
    return %c0_i32, %c0_i32_0 : i32, i32
  }
  func.func @transform_6(%arg0: i32) -> (i32, i32) {
    %c0_i32 = arith.constant 0 : i32
    %c0_i32_0 = arith.constant 0 : i32
    %c0_i32_1 = arith.constant 0 : i32
    return %c0_i32, %c0_i32_0 : i32, i32
  }
  func.func @transform_7(%arg0: i32) -> (i32, i32) {
    %c0_i32 = arith.constant 0 : i32
    %c0_i32_0 = arith.constant 0 : i32
    %c0_i32_1 = arith.constant 0 : i32
    return %c0_i32, %c0_i32_0 : i32, i32
  }
  func.func @transform_8(%arg0: i32) -> (i32, i32) {
    %c0_i32 = arith.constant 0 : i32
    %c0_i32_0 = arith.constant 0 : i32
    %c0_i32_1 = arith.constant 0 : i32
    return %c0_i32, %c0_i32_0 : i32, i32
  }
  func.func @transform_9(%arg0: i32) -> (i32, i32) {
    %c0_i32 = arith.constant 0 : i32
    %c0_i32_0 = arith.constant 0 : i32
    return %arg0, %c0_i32 : i32, i32
  }
}

</mosaic_0001>

<bundles_post_ra>
// kernel: tpu_custom_call.1
= control target key start
LH: loop header
LB: loop body
LE: loop exit
PB: predicated region body
PF: predicated region fallthrough
CT: control target
= control target key end

     0   :  { %vm108_vm0 = vcmask 1043456   ;;  %vm59_vm1 = vcmask 97280   ;;  %vm282_vm2 = vcmask 130048   ;;  %vm934_vm3 = vcmask 1041409   ;;  %s2268_s1 = inlined_call_operand.vmem [shape: f32[12,16], index: 1, kind: input, shape index: {}]   ;;  %s2269_s0 = inlined_call_operand.vmem [shape: f32[128,12], index: 0, kind: input, shape index: {}]   ;;  %s2270_s3 = inlined_call_operand.vmem [shape: f32[16,16], index: 3, kind: input, shape index: {}]   ;;  %s2271_s5 = inlined_call_operand.vmem [shape: f32[16,16], index: 5, kind: input, shape index: {}]   ;;  %s2272_s2 = inlined_call_operand.vmem [shape: f32[1,16], index: 2, kind: input, shape index: {}]   ;;  %s2273_s4 = inlined_call_operand.vmem [shape: f32[1,16], index: 4, kind: input, shape index: {}]   ;;  %s2274_s8 = inlined_call_operand.<no memory space> [shape: f32[1,1], index: 8, kind: input, shape index: {}]   ;;  %s2275_s6 = inlined_call_operand.vmem [shape: f32[1,16], index: 6, kind: input, shape index: {}]   ;;  %s2276_s7 = inlined_call_operand.vmem [shape: f32[1,16], index: 7, kind: input, shape index: {}]   ;;  %s2277_s9 = inlined_call_operand.vmem [shape: f32[16,8], index: 9, kind: output, shape index: {}]  }
   0x1   :  { %v51_v0 = vld [vmem:[%s2268_s1 + $0x8] sm:$0xf]  ;;  %v50_v1 = vld [vmem:[%s2268_s1] sm:$0xff]  ;;  %v36_v4 = vld [vmem:[%s2269_s0 + $0x10] sm:$0xff]  ;;  %vm936_vm4 = vcmask 1042434   ;;  %vm938_vm5 = vcmask 1043459  }
   0x2   :  { %v34_v2 = vld [vmem:[%s2269_s0] sm:$0xff]  ;;  %1608 = vmatprep.subr.msk.mxu0 %vm108_vm0, %v51_v0  ;;  %v35_v3 = vld [vmem:[%s2269_s0 + $0x8] sm:$0xff]  ;;  %1692 = vmatprep.subr.msk.mxu1 %vm108_vm0, %v51_v0  ;;  %v44_v7 = vld [vmem:[%s2269_s0 + $0x50] sm:$0xff]  ;;  %vm940_vm6 = vcmask 1044484   ;;  %vm942_vm7 = vcmask 1045509   ;;  %vm944_vm8 = vcmask 1046534  }
   0x3   :  { %1612 = vmatprep.mubr.msk.f32.mxu0 %vm59_vm1, %v34_v2  ;;  %1609 = vmatpush3.msk.msra.mxu0 %vm108_vm0, %v51_v0  ;;  %v42_v5 = vld [vmem:[%s2269_s0 + $0x40] sm:$0xff]  ;;  %v43_v6 = vld [vmem:[%s2269_s0 + $0x48] sm:$0xff]  ;;  %v37_v8 = vld [vmem:[%s2269_s0 + $0x18] sm:$0xff]  ;;  %vm946_vm9 = vcmask 1047559   ;;  %vm957_vm10 = vcmask 64512  }
   0x4   :  { %1610 = vmatprep.subr.mxu0 %v50_v1  ;;  %1694 = vmatpush3.msk.msra.mxu1 %vm108_vm0, %v51_v0  ;;  %v274_v9 = vld [vmem:[%s2270_s3 + $0x8] sm:$0xff]  ;;  %v273_v10 = vld [vmem:[%s2270_s3] sm:$0xff]  ;;  %v45_v12 = vld [vmem:[%s2269_s0 + $0x58] sm:$0xff] }
   0x5   :  { %1611 = vmatpush3.msra.mxu0 %v50_v1  ;;  %1693 = vmatprep.subr.mxu1 %v50_v1  ;;  %v38_v11 = vld [vmem:[%s2269_s0 + $0x20] sm:$0xff]  ;;  %v39_v14 = vld [vmem:[%s2269_s0 + $0x28] sm:$0xff]  ;;  %v40_v15 = vld [vmem:[%s2269_s0 + $0x30] sm:$0xff] }
   0x6   :  { %1613 = vmatmul.mubr.msk.f32.vlgmr.msra.gmra.mxu0 %vm59_vm1, %v35_v3  ;;  %1695 = vmatpush3.msra.mxu1 %v50_v1  ;;  %v46_v13 = vld [vmem:[%s2269_s0 + $0x60] sm:$0xff]  ;;  %v47_v16 = vld [vmem:[%s2269_s0 + $0x68] sm:$0xff]  ;;  %v48_v17 = vld [vmem:[%s2269_s0 + $0x70] sm:$0xff] }
   0x7   :  { %1615 = vmatprep.mubr.msk.f32.mxu0 %vm59_vm1, %v36_v4  ;;  %1624 = vmatprep.mubr.msk.f32.mxu1 %vm59_vm1, %v42_v5  ;;  %v41_v18 = vld [vmem:[%s2269_s0 + $0x38] sm:$0xff]  ;;  %v493_v20 = vld [vmem:[%s2271_s5 + $0x8] sm:$0xff]  ;;  %v492_v21 = vld [vmem:[%s2271_s5] sm:$0xff] }
   0x8   :  { %1625 = vmatmul.mubr.msk.f32.vlgmr.msra.gmra.mxu1 %vm59_vm1, %v43_v6  ;;  %1636 = vmatprep.subr.mxu1 %v274_v9  ;;  %v49_v19 = vld [vmem:[%s2269_s0 + $0x78] sm:$0xff]  ;;  %v1500_v22 = vld [vmem:[%s2272_s2] ss:$0 sm:$0xff] }
   0x9   :  { %1627 = vmatprep.mubr.msk.f32.mxu1 %vm59_vm1, %v44_v7  ;;  %1637 = vmatpush3.msra.mxu1 %v274_v9  ;;  %v1518_v7 = vld [vmem:[%s2273_s4] ss:$0 sm:$0xff] }
   0xa   :  { %1616 = vmatmul.mubr.msk.f32.gmra.mxu0 %vm59_vm1, %v37_v8  ;;  %1638 = vmatprep.subr.mxu1 %v273_v10 }
   0xb   :  { %1618 = vmatprep.mubr.msk.f32.mxu0 %vm59_vm1, %v38_v11  ;;  %1639 = vmatpush3.msra.mxu1 %v273_v10 }
   0xc   :  { %1628 = vmatmul.mubr.msk.f32.gmra.mxu1 %vm59_vm1, %v45_v12  ;;  %1664 = vmatprep.subr.mxu0 %v493_v20 }
   0xd   :  { %1630 = vmatprep.mubr.msk.f32.mxu1 %vm59_vm1, %v46_v13  ;;  %1665 = vmatpush3.msra.mxu0 %v493_v20 }
   0xe   :  { %1619 = vmatmul.mubr.msk.f32.gmra.mxu0 %vm59_vm1, %v39_v14  ;;  %1666 = vmatprep.subr.mxu0 %v492_v21 }
   0xf   :  { %1621 = vmatprep.mubr.msk.f32.mxu0 %vm59_vm1, %v40_v15  ;;  %1667 = vmatpush3.msra.mxu0 %v492_v21 }
  0x10   :  { %1631 = vmatmul.mubr.msk.f32.gmra.mxu1 %vm59_vm1, %v47_v16 }
  0x11   :  { %1633 = vmatprep.mubr.msk.f32.mxu1 %vm59_vm1, %v48_v17 }
  0x12   :  { %1622 = vmatmul.mubr.msk.f32.gmra.mxu0 %vm59_vm1, %v41_v18 }
  0x14   :  { %1634 = vmatmul.mubr.msk.f32.gmra.mxu1 %vm59_vm1, %v49_v19 }
  0xc6   :  { %v1614_v23 = vpop.f32.mrf.mxu0 }
  0xc7   :  { %v184_v24 = vadd.f32 %v1614_v23, %v1500_v22 }
  0xc8   :  { %v178_v25 = vpop.f32.mrf.mxu0  ;;  %v1626_v26 = vpop.f32.mrf.mxu1 }
  0xc9   :  { %v179_v27 = vadd.f32 %v1500_v22, %v178_v25  ;;  %v258_v32 = vmax.f32 %v184_v24, 0.0  ;;  %v224_v52 = vadd.f32 %v1626_v26, %v1500_v22 }
  0xca   :  { %v1617_v28 = vpop.f32.mrf.mxu0  ;;  %v218_v29 = vpop.f32.mrf.mxu1 }
  0xcb   :  { %v257_v30 = vmax.f32 %v179_v27, 0.0  ;;  %v194_v31 = vadd.f32 %v1617_v28, %v1500_v22  ;;  %v219_v48 = vadd.f32 %v1500_v22, %v218_v29  ;;  %v266_v58 = vmax.f32 %v224_v52, 0.0 }
  0xcc   :  { %v188_v33 = vpop.f32.mrf.mxu0  ;;  %v1629_v34 = vpop.f32.mrf.mxu1 }
  0xcd   :  { %v189_v35 = vadd.f32 %v1500_v22, %v188_v33  ;;  %1640 = vmatprep.mubr.msk.f32.mxu1 %vm282_vm2, %v257_v30  ;;  %v260_v36 = vmax.f32 %v194_v31, 0.0  ;;  %v265_v55 = vmax.f32 %v219_v48, 0.0  ;;  %v234_v59 = vadd.f32 %v1629_v34, %v1500_v22 }
  0xce   :  { %v1620_v37 = vpop.f32.mrf.mxu0  ;;  %1641 = vmatmul.mubr.msk.f32.vlgmr.msra.gmra.mxu1 %vm282_vm2, %v258_v32  ;;  %v228_v41 = vpop.f32.mrf.mxu1 }
  0xcf   :  { %v259_v38 = vmax.f32 %v189_v35, 0.0  ;;  %v204_v39 = vadd.f32 %v1620_v37, %v1500_v22  ;;  %v229_v56 = vadd.f32 %v1500_v22, %v228_v41  ;;  %v268_v63 = vmax.f32 %v234_v59, 0.0 }
  0xd0   :  { %v198_v40 = vpop.f32.mrf.mxu0  ;;  %v1632_v45 = vpop.f32.mrf.mxu1 }
  0xd1   :  { %v199_v42 = vadd.f32 %v1500_v22, %v198_v40  ;;  %1643 = vmatprep.mubr.msk.f32.mxu1 %vm282_vm2, %v259_v38  ;;  %v262_v43 = vmax.f32 %v204_v39, 0.0  ;;  %v267_v60 = vmax.f32 %v229_v56, 0.0  ;;  %v244_v0 = vadd.f32 %v1632_v45, %v1500_v22 }
  0xd2   :  { %v1623_v44 = vpop.f32.mrf.mxu0  ;;  %1644 = vmatmul.mubr.msk.f32.gmra.mxu1 %vm282_vm2, %v260_v36  ;;  %v238_v53 = vpop.f32.mrf.mxu1  ;;  %v14_v56 = vstv %s2274_s8 }
  0xd3   :  { %v261_v46 = vmax.f32 %v199_v42, 0.0  ;;  %v214_v47 = vadd.f32 %v1623_v44, %v1500_v22  ;;  %v239_v61 = vadd.f32 %v1500_v22, %v238_v53  ;;  %v270_v3 = vmax.f32 %v244_v0, 0.0  ;;  %15 = vst [vmem:[#allocation2] sm:$0x1] %v14_v56 }
  0xd4   :  { %v208_v49 = vpop.f32.mrf.mxu0  ;;  %v1635_v57 = vpop.f32.mrf.mxu1 }
  0xd5   :  { %v209_v50 = vadd.f32 %v1500_v22, %v208_v49  ;;  %1646 = vmatprep.mubr.msk.f32.mxu1 %vm282_vm2, %v261_v46  ;;  %v264_v51 = vmax.f32 %v214_v47, 0.0  ;;  %v269_v1 = vmax.f32 %v239_v61, 0.0  ;;  %v254_v4 = vadd.f32 %v1635_v57, %v1500_v22  ;;  %v1912_v57 = vld [vmem:[%s2275_s6] ss:$0 sm:$0xff] }
  0xd6   :  { %1647 = vmatmul.mubr.msk.f32.gmra.mxu1 %vm282_vm2, %v262_v43  ;;  %v248_v62 = vpop.f32.mrf.mxu1  ;;  %v1918_v61 = vld [vmem:[%s2276_s7] ss:$0 sm:$0xff] }
  0xd7   :  { %v263_v54 = vmax.f32 %v209_v50, 0.0  ;;  %v249_v2 = vadd.f32 %v1500_v22, %v248_v62  ;;  %v272_v6 = vmax.f32 %v254_v4, 0.0 }
  0xd9   :  { %1649 = vmatprep.mubr.msk.f32.mxu1 %vm282_vm2, %v263_v54  ;;  %v271_v5 = vmax.f32 %v249_v2, 0.0 }
  0xda   :  { %1650 = vmatmul.mubr.msk.f32.gmra.mxu1 %vm282_vm2, %v264_v51 }
  0xdb   :  { %1652 = vmatprep.mubr.msk.f32.mxu1 %vm282_vm2, %v265_v55 }
  0xde   :  { %1653 = vmatmul.mubr.msk.f32.gmra.mxu1 %vm282_vm2, %v266_v58 }
  0xdf   :  { %1655 = vmatprep.mubr.msk.f32.mxu1 %vm282_vm2, %v267_v60 }
  0xe2   :  { %1656 = vmatmul.mubr.msk.f32.gmra.mxu1 %vm282_vm2, %v268_v63 }
  0xe3   :  { %1658 = vmatprep.mubr.msk.f32.mxu1 %vm282_vm2, %v269_v1 }
  0xe6   :  { %1659 = vmatmul.mubr.msk.f32.gmra.mxu1 %vm282_vm2, %v270_v3 }
  0xe7   :  { %1661 = vmatprep.mubr.msk.f32.mxu1 %vm282_vm2, %v271_v5 }
  0xea   :  { %1662 = vmatmul.mubr.msk.f32.gmra.mxu1 %vm282_vm2, %v272_v6 }
 0x18e   :  { %v1642_v8 = vpop.f32.mrf.mxu1 }
 0x18f   :  { %v403_v9 = vadd.f32 %v1642_v8, %v1518_v7 }
 0x190   :  { %v397_v10 = vpop.f32.mrf.mxu1 }
 0x191   :  { %v398_v11 = vadd.f32 %v1518_v7, %v397_v10  ;;  %v477_v14 = vmax.f32 %v403_v9, 0.0 }
 0x192   :  { %v1645_v12 = vpop.f32.mrf.mxu1 }
 0x193   :  { %v476_v13 = vmax.f32 %v398_v11, 0.0  ;;  %v413_v15 = vadd.f32 %v1645_v12, %v1518_v7 }
 0x194   :  { %v407_v16 = vpop.f32.mrf.mxu1 }
 0x195   :  { %v408_v17 = vadd.f32 %v1518_v7, %v407_v16  ;;  %1668 = vmatprep.mubr.msk.f32.mxu0 %vm282_vm2, %v476_v13  ;;  %v479_v20 = vmax.f32 %v413_v15, 0.0 }
 0x196   :  { %v1648_v18 = vpop.f32.mrf.mxu1  ;;  %1669 = vmatmul.mubr.msk.f32.vlgmr.msra.gmra.mxu0 %vm282_vm2, %v477_v14 }
 0x197   :  { %v478_v19 = vmax.f32 %v408_v17, 0.0  ;;  %v423_v21 = vadd.f32 %v1648_v18, %v1518_v7 }
 0x198   :  { %v417_v22 = vpop.f32.mrf.mxu1 }
 0x199   :  { %v418_v23 = vadd.f32 %v1518_v7, %v417_v22  ;;  %1671 = vmatprep.mubr.msk.f32.mxu0 %vm282_vm2, %v478_v19  ;;  %v481_v26 = vmax.f32 %v423_v21, 0.0 }
 0x19a   :  { %v1651_v24 = vpop.f32.mrf.mxu1  ;;  %1672 = vmatmul.mubr.msk.f32.gmra.mxu0 %vm282_vm2, %v479_v20 }
 0x19b   :  { %v480_v25 = vmax.f32 %v418_v23, 0.0  ;;  %v433_v27 = vadd.f32 %v1651_v24, %v1518_v7 }
 0x19c   :  { %v427_v28 = vpop.f32.mrf.mxu1 }
 0x19d   :  { %v428_v29 = vadd.f32 %v1518_v7, %v427_v28  ;;  %1674 = vmatprep.mubr.msk.f32.mxu0 %vm282_vm2, %v480_v25  ;;  %v483_v32 = vmax.f32 %v433_v27, 0.0 }
 0x19e   :  { %v1654_v30 = vpop.f32.mrf.mxu1  ;;  %1675 = vmatmul.mubr.msk.f32.gmra.mxu0 %vm282_vm2, %v481_v26 }
 0x19f   :  { %v482_v31 = vmax.f32 %v428_v29, 0.0  ;;  %v443_v33 = vadd.f32 %v1654_v30, %v1518_v7  ;;  %v1735_v30 = vmov 0  }
 0x1a0   :  { %v437_v34 = vpop.f32.mrf.mxu1  ;;  %1697 = vset.pattern.permute.xlu1 %v1735_v30  ;;  %1698 = vset.pattern.permute.xlu0 %v1735_v30 }
 0x1a1   :  { %v438_v35 = vadd.f32 %v1518_v7, %v437_v34  ;;  %1677 = vmatprep.mubr.msk.f32.mxu0 %vm282_vm2, %v482_v31  ;;  %v485_v39 = vmax.f32 %v443_v33, 0.0 }
 0x1a2   :  { %v1657_v36 = vpop.f32.mrf.mxu1  ;;  %1678 = vmatmul.mubr.msk.f32.gmra.mxu0 %vm282_vm2, %v483_v32 }
 0x1a3   :  { %v484_v37 = vmax.f32 %v438_v35, 0.0  ;;  %v453_v38 = vadd.f32 %v1657_v36, %v1518_v7 }
 0x1a4   :  { %v447_v40 = vpop.f32.mrf.mxu1 }
 0x1a5   :  { %v448_v41 = vadd.f32 %v1518_v7, %v447_v40  ;;  %1680 = vmatprep.mubr.msk.f32.mxu0 %vm282_vm2, %v484_v37  ;;  %v487_v42 = vmax.f32 %v453_v38, 0.0 }
 0x1a6   :  { %1681 = vmatmul.mubr.msk.f32.gmra.mxu0 %vm282_vm2, %v485_v39  ;;  %v1660_v43 = vpop.f32.mrf.mxu1 }
 0x1a7   :  { %v486_v44 = vmax.f32 %v448_v41, 0.0  ;;  %v463_v45 = vadd.f32 %v1660_v43, %v1518_v7 }
 0x1a8   :  { %v457_v46 = vpop.f32.mrf.mxu1 }
 0x1a9   :  { %1683 = vmatprep.mubr.msk.f32.mxu0 %vm282_vm2, %v486_v44  ;;  %v458_v47 = vadd.f32 %v1518_v7, %v457_v46  ;;  %v489_v48 = vmax.f32 %v463_v45, 0.0 }
 0x1aa   :  { %1684 = vmatmul.mubr.msk.f32.gmra.mxu0 %vm282_vm2, %v487_v42  ;;  %v1663_v49 = vpop.f32.mrf.mxu1 }
 0x1ab   :  { %v488_v50 = vmax.f32 %v458_v47, 0.0  ;;  %v473_v51 = vadd.f32 %v1663_v49, %v1518_v7 }
 0x1ac   :  { %v467_v52 = vpop.f32.mrf.mxu1 }
 0x1ad   :  { %1686 = vmatprep.mubr.msk.f32.mxu0 %vm282_vm2, %v488_v50  ;;  %v468_v53 = vadd.f32 %v1518_v7, %v467_v52  ;;  %v491_v54 = vmax.f32 %v473_v51, 0.0 }
 0x1ae   :  { %1687 = vmatmul.mubr.msk.f32.gmra.mxu0 %vm282_vm2, %v489_v48 }
 0x1af   :  { %v490_v55 = vmax.f32 %v468_v53, 0.0 }
 0x1b1   :  { %1689 = vmatprep.mubr.msk.f32.mxu0 %vm282_vm2, %v490_v55 }
 0x1b2   :  { %1690 = vmatmul.mubr.msk.f32.gmra.mxu0 %vm282_vm2, %v491_v54 }
 0x256   :  { %v1670_v58 = vpop.f32.mrf.mxu0 }
 0x257   :  { %v621_v59 = vadd.f32 %v1670_v58, %v1912_v57 }
 0x258   :  { %v615_v60 = vpop.f32.mrf.mxu0 }
 0x259   :  { %v695_v62 = vmax.f32 %v621_v59, 0.0  ;;  %v616_v63 = vadd.f32 %v1912_v57, %v615_v60 }
 0x25a   :  { %v1673_v0 = vpop.f32.mrf.mxu0 }
 0x25b   :  { %v694_v1 = vmax.f32 %v616_v63, 0.0  ;;  %v631_v2 = vadd.f32 %v1673_v0, %v1912_v57  ;;  %v718_v3 = vmul.f32 %v1918_v61, %v695_v62 }
 0x25c   :  { %v625_v4 = vpop.f32.mrf.mxu0 }
 0x25d   :  { %v697_v5 = vmax.f32 %v631_v2, 0.0  ;;  %v626_v6 = vadd.f32 %v1912_v57, %v625_v4  ;;  %v736_v7 = vsel %vm282_vm2, %v718_v3, 0.0  ;;  %v717_v8 = vmul.f32 %v1918_v61, %v694_v1 }
 0x25e   :  { %737 = vadd.xlane.f32.xlu0 %v736_v7  ;;  %v1676_v9 = vpop.f32.mrf.mxu0 }
 0x25f   :  { %v641_v10 = vadd.f32 %v1676_v9, %v1912_v57  ;;  %v696_v12 = vmax.f32 %v626_v6, 0.0  ;;  %v733_v13 = vsel %vm282_vm2, %v717_v8, 0.0  ;;  %v720_v14 = vmul.f32 %v1918_v61, %v697_v5 }
 0x260   :  { %v635_v11 = vpop.f32.mrf.mxu0 }
 0x261   :  { %v699_v16 = vmax.f32 %v641_v10, 0.0  ;;  %v636_v17 = vadd.f32 %v1912_v57, %v635_v11  ;;  %v742_v19 = vsel %vm282_vm2, %v720_v14, 0.0  ;;  %v719_v20 = vmul.f32 %v1918_v61, %v696_v12 }
 0x262   :  { %v1679_v15 = vpop.f32.mrf.mxu0  ;;  %734 = vadd.xlane.f32.xlu0 %v733_v13 }
 0x263   :  { %v698_v23 = vmax.f32 %v636_v17, 0.0  ;;  %v722_v26 = vmul.f32 %v1918_v61, %v699_v16  ;;  %v739_v29 = vsel %vm282_vm2, %v719_v20, 0.0  ;;  %v651_v35 = vadd.f32 %v1679_v15, %v1912_v57 }
 0x264   :  { %v645_v18 = vpop.f32.mrf.mxu0 }
 0x265   :  { %v646_v24 = vadd.f32 %v1912_v57, %v645_v18  ;;  %v748_v38 = vsel %vm282_vm2, %v722_v26, 0.0  ;;  %v721_v39 = vmul.f32 %v1918_v61, %v698_v23  ;;  %v701_v45 = vmax.f32 %v651_v35, 0.0 }
 0x266   :  { %v1682_v21 = vpop.f32.mrf.mxu0  ;;  %743 = vadd.xlane.f32.xlu0 %v742_v19 }
 0x267   :  { %v661_v22 = vadd.f32 %v1682_v21, %v1912_v57  ;;  %v700_v36 = vmax.f32 %v646_v24, 0.0  ;;  %v745_v46 = vsel %vm282_vm2, %v721_v39, 0.0  ;;  %v724_v54 = vmul.f32 %v1918_v61, %v701_v45 }
 0x268   :  { %v655_v25 = vpop.f32.mrf.mxu0 }
 0x269   :  { %v703_v27 = vmax.f32 %v661_v22, 0.0  ;;  %v656_v28 = vadd.f32 %v1912_v57, %v655_v25  ;;  %v723_v47 = vmul.f32 %v1918_v61, %v700_v36  ;;  %v754_v62 = vsel %vm282_vm2, %v724_v54, 0.0 }
 0x26a   :  { %v1685_v31 = vpop.f32.mrf.mxu0  ;;  %740 = vadd.xlane.f32.xlu0 %v739_v29 }
 0x26b   :  { %v702_v32 = vmax.f32 %v656_v28, 0.0  ;;  %v671_v33 = vadd.f32 %v1685_v31, %v1912_v57  ;;  %v726_v34 = vmul.f32 %v1918_v61, %v703_v27  ;;  %v751_v53 = vsel %vm282_vm2, %v723_v47, 0.0 }
 0x26c   :  { %v665_v37 = vpop.f32.mrf.mxu0 }
 0x26d   :  { %v705_v40 = vmax.f32 %v671_v33, 0.0  ;;  %v666_v41 = vadd.f32 %v1912_v57, %v665_v37  ;;  %v760_v42 = vsel %vm282_vm2, %v726_v34, 0.0  ;;  %v725_v43 = vmul.f32 %v1918_v61, %v702_v32 }
 0x26e   :  { %761 = vadd.xlane.f32.xlu1 %v760_v42  ;;  %749 = vadd.xlane.f32.xlu0 %v748_v38  ;;  %v1688_v44 = vpop.f32.mrf.mxu0 }
 0x26f   :  { %v704_v48 = vmax.f32 %v666_v41, 0.0  ;;  %v681_v49 = vadd.f32 %v1688_v44, %v1912_v57  ;;  %v757_v50 = vsel %vm282_vm2, %v725_v43, 0.0  ;;  %v728_v51 = vmul.f32 %v1918_v61, %v705_v40 }
 0x270   :  { %v675_v52 = vpop.f32.mrf.mxu0 }
 0x271   :  { %v707_v55 = vmax.f32 %v681_v49, 0.0  ;;  %v676_v56 = vadd.f32 %v1912_v57, %v675_v52  ;;  %v766_v58 = vsel %vm282_vm2, %v728_v51, 0.0  ;;  %v727_v59 = vmul.f32 %v1918_v61, %v704_v48 }
 0x272   :  { %758 = vadd.xlane.f32.xlu1 %v757_v50  ;;  %746 = vadd.xlane.f32.xlu0 %v745_v46  ;;  %v1691_v60 = vpop.f32.mrf.mxu0  ;;  %v868_v50 = vlaneseq }
 0x273   :  { %v706_v63 = vmax.f32 %v676_v56, 0.0  ;;  %v691_v0 = vadd.f32 %v1691_v60, %v1912_v57  ;;  %v763_v1 = vsel %vm282_vm2, %v727_v59, 0.0  ;;  %v730_v2 = vmul.f32 %v1918_v61, %v707_v55 }
 0x274   :  { %v685_v3 = vpop.f32.mrf.mxu0  ;;  %v869_v52 = vand.u32 127, %v868_v50 }
 0x275   :  { %v709_v4 = vmax.f32 %v691_v0, 0.0  ;;  %v686_v5 = vadd.f32 %v1912_v57, %v685_v3  ;;  %v772_v6 = vsel %vm282_vm2, %v730_v2, 0.0  ;;  %v729_v7 = vmul.f32 %v1918_v61, %v706_v63  ;;  %v1553_v57 = vld [vmem:[#allocation2] ss:$0 sm:$0xff] }
 0x276   :  { %767 = vadd.xlane.f32.xlu1 %v766_v58  ;;  %752 = vadd.xlane.f32.xlu0 %v751_v53  ;;  %v2015_v53 = vshrl.u32 %v868_v50, 7 }
 0x277   :  { %v708_v8 = vmax.f32 %v686_v5, 0.0  ;;  %v769_v9 = vsel %vm282_vm2, %v729_v7, 0.0  ;;  %v732_v10 = vmul.f32 %v1918_v61, %v709_v4 }
 0x278   :  { %v2018_v56 = vsub.s32 %v869_v52, %v2015_v53  ;;  %v2056_v50 = vsub.s32 1, %v2015_v53  ;;  %v2062_v52 = vsub.s32 3, %v2015_v53 }
 0x279   :  { %v778_v11 = vsel %vm282_vm2, %v732_v10, 0.0  ;;  %v731_v12 = vmul.f32 %v1918_v61, %v708_v8 }
 0x27a   :  { %764 = vadd.xlane.f32.xlu1 %v763_v1  ;;  %755 = vadd.xlane.f32.xlu0 %v754_v62 }
 0x27b   :  { %v775_v13 = vsel %vm282_vm2, %v731_v12, 0.0 }
 0x27e   :  { %773 = vadd.xlane.f32.xlu1 %v772_v6 }
 0x282   :  { %770 = vadd.xlane.f32.xlu1 %v769_v9 }
 0x286   :  { %779 = vadd.xlane.f32.xlu1 %v778_v11 }
 0x28a   :  { %776 = vadd.xlane.f32.xlu1 %v775_v13 }
 0x2e7   :  { %v738_v14 = vpop.xlane.xlu0 %737 }
 0x2e8   :  { %v1967_v15 = vadd.f32 %v1553_v57, %v738_v14 }
 0x2ea   :  { %824 = vperm.xlu1 %1697, %v1967_v15  }
 0x2eb   :  { %v735_v16 = vpop.xlane.xlu0 %734 }
 0x2ec   :  { %v1970_v17 = vadd.f32 %v1553_v57, %v735_v16 }
 0x2ee   :  { %821 = vperm.xlu0 %1698, %v1970_v17  }
 0x2ef   :  { %v744_v18 = vpop.xlane.xlu0 %743 }
 0x2f0   :  { %v1973_v19 = vadd.f32 %v1553_v57, %v744_v18 }
 0x2f2   :  { %830 = vperm.xlu1 %1697, %v1973_v19  }
 0x2f3   :  { %v741_v61 = vpop.xlane.xlu0 %740 }
 0x2f4   :  { %v1976_v20 = vadd.f32 %v1553_v57, %v741_v61 }
 0x2f6   :  { %827 = vperm.xlu1 %1697, %v1976_v20  }
 0x2f7   :  { %v762_v21 = vpop.xlane.xlu1 %761  ;;  %v750_v22 = vpop.xlane.xlu0 %749 }
 0x2f8   :  { %v1979_v23 = vadd.f32 %v1553_v57, %v750_v22  ;;  %v1985_v28 = vadd.f32 %v1553_v57, %v762_v21 }
 0x2fa   :  { %836 = vperm.xlu1 %1697, %v1979_v23  }
 0x2fb   :  { %v759_v24 = vpop.xlane.xlu1 %758  ;;  %v747_v25 = vpop.xlane.xlu0 %746 }
 0x2fc   :  { %v1982_v26 = vadd.f32 %v1553_v57, %v747_v25  ;;  %v1988_v30 = vadd.f32 %v1553_v57, %v759_v24 }
 0x2fe   :  { %833 = vperm.xlu1 %1697, %v1982_v26  }
 0x2ff   :  { %v768_v27 = vpop.xlane.xlu1 %767  ;;  %v753_v34 = vpop.xlane.xlu0 %752 }
 0x300   :  { %v1991_v32 = vadd.f32 %v1553_v57, %v768_v27  ;;  %v2003_v39 = vadd.f32 %v1553_v57, %v753_v34 }
 0x302   :  { %848 = vperm.xlu1 %1697, %v1985_v28  }
 0x303   :  { %v765_v29 = vpop.xlane.xlu1 %764  ;;  %v756_v40 = vpop.xlane.xlu0 %755 }
 0x304   :  { %v1997_v36 = vadd.f32 %v1553_v57, %v765_v29  ;;  %v2006_v42 = vadd.f32 %v1553_v57, %v756_v40 }
 0x306   :  { %845 = vperm.xlu1 %1697, %v1988_v30  }
 0x307   :  { %v774_v31 = vpop.xlane.xlu1 %773 }
 0x308   :  { %v1993_v33 = vadd.f32 %v1553_v57, %v774_v31 }
 0x30a   :  { %860 = vperm.xlu0 %1698, %v1993_v33   ;;  %854 = vperm.xlu1 %1697, %v1991_v32  }
 0x30b   :  { %v771_v35 = vpop.xlane.xlu1 %770 }
 0x30c   :  { %v1999_v37 = vadd.f32 %v1553_v57, %v771_v35 }
 0x30e   :  { %857 = vperm.xlu0 %1698, %v1999_v37   ;;  %851 = vperm.xlu1 %1697, %v1997_v36  }
 0x30f   :  { %v780_v38 = vpop.xlane.xlu1 %779 }
 0x310   :  { %v2012_v44 = vadd.f32 %v1553_v57, %v780_v38 }
 0x312   :  { %839 = vperm.xlu1 %1697, %v2003_v39  }
 0x313   :  { %v777_v41 = vpop.xlane.xlu1 %776 }
 0x314   :  { %v2008_v43 = vadd.f32 %v1553_v57, %v777_v41 }
 0x316   :  { %863 = vperm.xlu0 %1698, %v2008_v43   ;;  %842 = vperm.xlu1 %1697, %v2006_v42  }
 0x31a   :  { %866 = vperm.xlu0 %1698, %v2012_v44  }
 0x365   :  { %v825_v45 = vpop.permute.xlu1 %824 }
 0x366   :  { %v877_v63 = vrot.slane %v825_v45, %v2018_v56 }
 0x369   :  { %v822_v55 = vpop.permute.xlu0 %821 }
 0x36a   :  { %v873_v59 = vrot.slane %v822_v55, %v2018_v56 }
 0x36c   :  { %v935_v2 = vsel %vm934_vm3, %v877_v63, %v873_v59 }
 0x36d   :  { %v831_v46 = vpop.permute.xlu1 %830 }
 0x36e   :  { %v885_v7 = vrot.slane %v831_v46, %v2018_v56 }
 0x371   :  { %v828_v47 = vpop.permute.xlu1 %827 }
 0x372   :  { %v881_v60 = vrot.slane %v828_v47, %v2018_v56 }
 0x374   :  { %v937_v5 = vsel %vm936_vm4, %v881_v60, %v935_v2  ;;  %v2068_v60 = vsub.s32 4, %v2015_v53 }
 0x375   :  { %v837_v48 = vpop.permute.xlu1 %836  ;;  %v939_v12 = vsel %vm938_vm5, %v885_v7, %v937_v5 }
 0x376   :  { %v893_v16 = vrot.slane %v837_v48, %v2018_v56 }
 0x379   :  { %v834_v49 = vpop.permute.xlu1 %833 }
 0x37a   :  { %v889_v6 = vrot.slane %v834_v49, %v2018_v56  ;;  %v2053_v49 = vsub.s32 0, %v2015_v53 }
 0x37c   :  { %v941_v57 = vsel %vm940_vm6, %v889_v6, %v939_v12  ;;  %v2079_v6 = vsub.s32 5, %v2015_v53 }
 0x37d   :  { %v849_v51 = vpop.permute.xlu1 %848  ;;  %v943_v25 = vsel %vm942_vm7, %v893_v16, %v941_v57  ;;  %v2092_v57 = vsub.s32 6, %v2015_v53 }
 0x37e   :  { %v909_v3 = vrot.slane %v849_v51, %v2018_v56  ;;  %v2059_v51 = vsub.s32 2, %v2015_v53 }
 0x381   :  { %v846_v54 = vpop.permute.xlu1 %845 }
 0x382   :  { %v905_v0 = vrot.slane %v846_v54, %v2018_v56 }
 0x384   :  { %v948_v8 = vsel %vm934_vm3, %v909_v3, %v905_v0 }
 0x385   :  { %v855_v58 = vpop.permute.xlu1 %854  ;;  %v861_v62 = vpop.permute.xlu0 %860 }
 0x386   :  { %v917_v13 = vrot.slane %v855_v58, %v2018_v56  ;;  %v925_v34 = vrot.slane %v861_v62, %v2018_v56 }
 0x389   :  { %v852_v1 = vpop.permute.xlu1 %851  ;;  %v858_v10 = vpop.permute.xlu0 %857 }
 0x38a   :  { %v913_v4 = vrot.slane %v852_v1, %v2018_v56  ;;  %v921_v61 = vrot.slane %v858_v10, %v2018_v56 }
 0x38c   :  { %v949_v9 = vsel %vm936_vm4, %v913_v4, %v948_v8 }
 0x38d   :  { %v840_v11 = vpop.permute.xlu1 %839  ;;  %v950_v18 = vsel %vm938_vm5, %v917_v13, %v949_v9 }
 0x38e   :  { %v897_v14 = vrot.slane %v840_v11, %v2018_v56  ;;  %v951_v27 = vsel %vm940_vm6, %v921_v61, %v950_v18 }
 0x38f   :  { %v952_v45 = vsel %vm942_vm7, %v925_v34, %v951_v27 }
 0x390   :  { %v945_v31 = vsel %vm944_vm8, %v897_v14, %v943_v25 }
 0x391   :  { %v843_v21 = vpop.permute.xlu1 %842  ;;  %v864_v22 = vpop.permute.xlu0 %863 }
 0x392   :  { %v901_v24 = vrot.slane %v843_v21, %v2018_v56  ;;  %v929_v29 = vrot.slane %v864_v22, %v2018_v56 }
 0x394   :  { %v947_v35 = vsel %vm946_vm9, %v901_v24, %v945_v31  ;;  %v953_v46 = vsel %vm944_vm8, %v929_v29, %v952_v45 }
 0x395   :  { %v867_v38 = vpop.permute.xlu0 %866  ;;  %v958_v40 = vsel %vm957_vm10, %v947_v35, -inf }
 0x396   :  { %v933_v41 = vrot.slane %v867_v38, %v2018_v56  ;;  %959 = vmax.xlane.f32.xlu1 %v958_v40 }
 0x398   :  { %v954_v47 = vsel %vm946_vm9, %v933_v41, %v953_v46 }
 0x399   :  { %v961_v48 = vsel %vm957_vm10, %v954_v47, -inf }
 0x39a   :  { %962 = vmax.xlane.f32.xlu0 %v961_v48 }
 0x41f   :  { %v960_v54 = vpop.xlane.xlu1 %959 }
 0x420   :  { %v969_v55 = vrot.slane %v960_v54, %v2053_v49  ;;  %v973_v58 = vrot.slane %v960_v54, %v2056_v50  ;;  %v977_v59 = vrot.slane %v960_v54, %v2059_v51  ;;  %v981_v62 = vrot.slane %v960_v54, %v2062_v52 }
 0x421   :  { %v985_v7 = vrot.slane %v960_v54, %v2068_v60  ;;  %v989_v9 = vrot.slane %v960_v54, %v2079_v6  ;;  %v993_v21 = vrot.slane %v960_v54, %v2092_v57 }
 0x422   :  { %v1046_v63 = vsub.f32 %v1970_v17, %v969_v55  ;;  %v1047_v0 = vsub.f32 %v1967_v15, %v973_v58  ;;  %v1048_v1 = vsub.f32 %v1976_v20, %v977_v59  ;;  %v1049_v8 = vsub.f32 %v1973_v19, %v981_v62 }
 0x423   :  { %v2074_v2 = vpop.xlane.xlu0 %962  ;;  %v1050_v10 = vsub.f32 %v1982_v26, %v985_v7  ;;  %v1051_v14 = vsub.f32 %v1979_v23, %v989_v9  ;;  %v1052_v31 = vsub.f32 %v2003_v39, %v993_v21 }
 0x424   :  { %v1062_v3 = vmul.f32 1.442695, %v1046_v63  ;;  %v1064_v4 = vmul.f32 1.442695, %v1047_v0  ;;  %v1005_v5 = vrot.slane %v2074_v2, %v2056_v50  ;;  %v1066_v17 = vmul.f32 1.442695, %v1048_v1 }
 0x425   :  { %v1009_v15 = vrot.slane %v2074_v2, %v2059_v51  ;;  %v1068_v11 = vmul.f32 1.442695, %v1049_v8  ;;  %v1013_v12 = vrot.slane %v2074_v2, %v2062_v52  ;;  %v1070_v16 = vmul.f32 1.442695, %v1050_v10 }
 0x426   :  { %1699 = vpow2.f32 %v1062_v3  ;;  %v1055_v20 = vsub.f32 %v1985_v28, %v1005_v5  ;;  %v1001_v28 = vrot.slane %v2074_v2, %v2053_v49  ;;  %v1017_v26 = vrot.slane %v2074_v2, %v2068_v60 }
 0x427   :  { %1701 = vpow2.f32 %v1064_v4  ;;  %v1056_v13 = vsub.f32 %v1997_v36, %v1009_v15  ;;  %v1057_v18 = vsub.f32 %v1991_v32, %v1013_v12  ;;  %v2101_v36 = vsub.s32 7, %v2015_v53 }
 0x428   :  { %1703 = vpow2.f32 %v1066_v17  ;;  %v1080_v19 = vmul.f32 1.442695, %v1055_v20  ;;  %v1072_v22 = vmul.f32 1.442695, %v1051_v14  ;;  %v1054_v23 = vsub.f32 %v1988_v30, %v1001_v28 }
 0x429   :  { %1705 = vpow2.f32 %v1068_v11  ;;  %v1082_v61 = vmul.f32 1.442695, %v1056_v13  ;;  %v1021_v25 = vrot.slane %v2074_v2, %v2079_v6  ;;  %v1058_v27 = vsub.f32 %v1999_v37, %v1017_v26 }
 0x42a   :  { %1707 = vpow2.f32 %v1080_v19  ;;  %v1084_v32 = vmul.f32 1.442695, %v1057_v18  ;;  %v997_v53 = vrot.slane %v960_v54, %v2101_v36  ;;  %v1078_v30 = vmul.f32 1.442695, %v1054_v23 }
 0x42b   :  { %1709 = vpow2.f32 %v1070_v16  ;;  %v1025_v34 = vrot.slane %v2074_v2, %v2092_v57  ;;  %v1059_v35 = vsub.f32 %v1993_v33, %v1021_v25  ;;  %v1086_v37 = vmul.f32 1.442695, %v1058_v27 }
 0x42c   :  { %1711 = vpow2.f32 %v1082_v61  ;;  %v1053_v40 = vsub.f32 %v2006_v42, %v997_v53  ;;  %v1074_v41 = vmul.f32 1.442695, %v1052_v31  ;;  %v1029_v39 = vrot.slane %v2074_v2, %v2101_v36 }
 0x42d   :  { %1713 = vpow2.f32 %v1072_v22  ;;  %v1060_v46 = vsub.f32 %v2008_v43, %v1025_v34  ;;  %v1088_v47 = vmul.f32 1.442695, %v1059_v35 }
 0x42e   :  { %1715 = vpow2.f32 %v1084_v32  ;;  %v1076_v48 = vmul.f32 1.442695, %v1053_v40  ;;  %v1061_v54 = vsub.f32 %v2012_v44, %v1029_v39 }
 0x42f   :  { %1717 = vpow2.f32 %v1078_v30  ;;  %v1090_v55 = vmul.f32 1.442695, %v1060_v46 }
 0x430   :  { %1719 = vpow2.f32 %v1086_v37  ;;  %v1092_v59 = vmul.f32 1.442695, %v1061_v54 }
 0x431   :  { %1721 = vpow2.f32 %v1074_v41 }
 0x432   :  { %1723 = vpow2.f32 %v1088_v47 }
 0x433   :  { %v2105_v24 = vpop.eup %1699  ;;  %1725 = vpow2.f32 %v1076_v48 }
 0x434   :  { %v2110_v29 = vpop.eup %1701  ;;  %1111 = vperm.xlu0 %1698, %v2105_v24   ;;  %1727 = vpow2.f32 %v1090_v55 }
 0x435   :  { %1114 = vperm.xlu1 %1697, %v2110_v29   ;;  %v2119_v38 = vpop.eup %1703  ;;  %1729 = vpow2.f32 %v1092_v59 }
 0x436   :  { %v2123_v45 = vpop.eup %1705 }
 0x437   :  { %v2128_v33 = vpop.eup %1707 }
 0x438   :  { %1138 = vperm.xlu0 %1698, %v2128_v33   ;;  %v2132_v42 = vpop.eup %1709 }
 0x439   :  { %1117 = vperm.xlu1 %1697, %v2119_v38   ;;  %v2135_v58 = vpop.eup %1711 }
 0x43a   :  { %v2139_v43 = vpop.eup %1713 }
 0x43b   :  { %v2141_v62 = vpop.eup %1715 }
 0x43c   :  { %1141 = vperm.xlu0 %1698, %v2135_v58   ;;  %v2145_v44 = vpop.eup %1717 }
 0x43d   :  { %1120 = vperm.xlu1 %1697, %v2123_v45   ;;  %v2147_v63 = vpop.eup %1719 }
 0x43e   :  { %v2151_v0 = vpop.eup %1721 }
 0x43f   :  { %v2153_v1 = vpop.eup %1723 }
 0x440   :  { %1144 = vperm.xlu0 %1698, %v2141_v62   ;;  %v2157_v2 = vpop.eup %1725 }
 0x441   :  { %1123 = vperm.xlu1 %1697, %v2132_v42   ;;  %v2159_v3 = vpop.eup %1727 }
 0x442   :  { %v2163_v4 = vpop.eup %1729 }
 0x444   :  { %1147 = vperm.xlu0 %1698, %v2147_v63  }
 0x445   :  { %1126 = vperm.xlu1 %1697, %v2139_v43  }
 0x448   :  { %1150 = vperm.xlu0 %1698, %v2153_v1  }
 0x449   :  { %1135 = vperm.xlu1 %1697, %v2145_v44  }
 0x44c   :  { %1153 = vperm.xlu0 %1698, %v2159_v3  }
 0x44d   :  { %1129 = vperm.xlu1 %1697, %v2151_v0  }
 0x450   :  { %1156 = vperm.xlu0 %1698, %v2163_v4  }
 0x451   :  { %1132 = vperm.xlu1 %1697, %v2157_v2  }
 0x4af   :  { %v1112_v7 = vpop.permute.xlu0 %1111 }
 0x4b0   :  { %v1115_v5 = vpop.permute.xlu1 %1114  ;;  %v1161_v14 = vrot.slane %v1112_v7, %v2018_v56 }
 0x4b1   :  { %v1165_v19 = vrot.slane %v1115_v5, %v2018_v56 }
 0x4b3   :  { %v1139_v17 = vpop.permute.xlu0 %1138  ;;  %v1222_v53 = vsel %vm934_vm3, %v1165_v19, %v1161_v14 }
 0x4b4   :  { %v1118_v8 = vpop.permute.xlu1 %1117  ;;  %v1197_v16 = vrot.slane %v1139_v17, %v2018_v56 }
 0x4b5   :  { %v1169_v26 = vrot.slane %v1118_v8, %v2018_v56 }
 0x4b7   :  { %v1142_v20 = vpop.permute.xlu0 %1141  ;;  %v1223_v34 = vsel %vm936_vm4, %v1169_v26, %v1222_v53 }
 0x4b8   :  { %v1121_v15 = vpop.permute.xlu1 %1120  ;;  %v1201_v18 = vrot.slane %v1142_v20, %v2018_v56 }
 0x4b9   :  { %v1173_v61 = vrot.slane %v1121_v15, %v2018_v56 }
 0x4bb   :  { %v1145_v10 = vpop.permute.xlu0 %1144  ;;  %v1224_v40 = vsel %vm938_vm5, %v1173_v61, %v1223_v34 }
 0x4bc   :  { %v1124_v9 = vpop.permute.xlu1 %1123  ;;  %v1205_v21 = vrot.slane %v1145_v10, %v2018_v56 }
 0x4bd   :  { %v1177_v23 = vrot.slane %v1124_v9, %v2018_v56 }
 0x4bf   :  { %v1148_v12 = vpop.permute.xlu0 %1147  ;;  %v1225_v41 = vsel %vm940_vm6, %v1177_v23, %v1224_v40 }
 0x4c0   :  { %v1127_v11 = vpop.permute.xlu1 %1126  ;;  %v1209_v35 = vrot.slane %v1148_v12, %v2018_v56 }
 0x4c1   :  { %v1181_v31 = vrot.slane %v1127_v11, %v2018_v56 }
 0x4c3   :  { %v1151_v27 = vpop.permute.xlu0 %1150  ;;  %v1226_v48 = vsel %vm942_vm7, %v1181_v31, %v1225_v41 }
 0x4c4   :  { %v1136_v13 = vpop.permute.xlu1 %1135  ;;  %v1213_v54 = vrot.slane %v1151_v27, %v2018_v56 }
 0x4c5   :  { %v1193_v28 = vrot.slane %v1136_v13, %v2018_v56 }
 0x4c7   :  { %v1229_v22 = vsel %vm934_vm3, %v1197_v16, %v1193_v28  ;;  %v1154_v46 = vpop.permute.xlu0 %1153 }
 0x4c8   :  { %v1230_v25 = vsel %vm936_vm4, %v1201_v18, %v1229_v22  ;;  %v1130_v32 = vpop.permute.xlu1 %1129  ;;  %v1217_v59 = vrot.slane %v1154_v46, %v2018_v56 }
 0x4c9   :  { %v1231_v30 = vsel %vm938_vm5, %v1205_v21, %v1230_v25  ;;  %v1185_v37 = vrot.slane %v1130_v32, %v2018_v56 }
 0x4ca   :  { %v1232_v39 = vsel %vm940_vm6, %v1209_v35, %v1231_v30 }
 0x4cb   :  { %v1227_v5 = vsel %vm944_vm8, %v1185_v37, %v1226_v48  ;;  %v1233_v7 = vsel %vm942_vm7, %v1213_v54, %v1232_v39  ;;  %v1157_v17 = vpop.permute.xlu0 %1156 }
 0x4cc   :  { %v1133_v47 = vpop.permute.xlu1 %1132  ;;  %v1221_v20 = vrot.slane %v1157_v17, %v2018_v56  ;;  %v1234_v9 = vsel %vm944_vm8, %v1217_v59, %v1233_v7 }
 0x4cd   :  { %v1189_v55 = vrot.slane %v1133_v47, %v2018_v56 }
 0x4ce   :  { %v1235_v10 = vsel %vm946_vm9, %v1221_v20, %v1234_v9 }
 0x4cf   :  { %v1228_v8 = vsel %vm946_vm9, %v1189_v55, %v1227_v5  ;;  %v1241_v11 = vsel %vm957_vm10, %v1235_v10, 0.0 }
 0x4d0   :  { %v1238_v15 = vsel %vm957_vm10, %v1228_v8, 0.0  ;;  %1242 = vadd.xlane.f32.xlu0 %v1241_v11 }
 0x4d1   :  { %1239 = vadd.xlane.f32.xlu1 %v1238_v15 }
 0x559   :  { %v1243_v13 = vpop.xlane.xlu0 %1242 }
 0x55a   :  { %v1240_v12 = vpop.xlane.xlu1 %1239 }
 0x55b   :  { %1731 = vrcp.f32 %v1240_v12 }
 0x55c   :  { %1733 = vrcp.f32 %v1243_v13 }
 0x568   :  { %v1732_v19 = vpop.eup %1731 }
 0x569   :  { %v1246_v14 = vmul.f32 %v1732_v19, %v1240_v12  ;;  %v1734_v28 = vpop.eup %1733 }
 0x56a   :  { %v1247_v18 = vmul.f32 %v1734_v28, %v1243_v13 }
 0x56b   :  { %v1248_v16 = vsub.f32 2.0, %v1246_v14 }
 0x56c   :  { %v1249_v61 = vsub.f32 2.0, %v1247_v18 }
 0x56d   :  { %v1250_v26 = vmul.f32 %v1732_v19, %v1248_v16 }
 0x56e   :  { %v1251_v23 = vmul.f32 %v1734_v28, %v1249_v61 }
 0x56f   :  { %v1261_v21 = vrot.slane %v1250_v26, %v2056_v50  ;;  %v1257_v22 = vrot.slane %v1250_v26, %v2053_v49  ;;  %v1265_v32 = vrot.slane %v1250_v26, %v2059_v51  ;;  %v1269_v34 = vrot.slane %v1250_v26, %v2062_v52 }
 0x570   :  { %v1293_v53 = vrot.slane %v1251_v23, %v2056_v50  ;;  %v1297_v35 = vrot.slane %v1251_v23, %v2059_v51  ;;  %v1273_v37 = vrot.slane %v1250_v26, %v2068_v60  ;;  %v1301_v40 = vrot.slane %v1251_v23, %v2062_v52 }
 0x571   :  { %v1335_v25 = vmul.f32 %v2110_v29, %v1261_v21  ;;  %v1334_v27 = vmul.f32 %v2105_v24, %v1257_v22  ;;  %v1336_v31 = vmul.f32 %v2119_v38, %v1265_v32  ;;  %v1337_v29 = vmul.f32 %v2123_v45, %v1269_v34 }
 0x572   :  { %v1343_v30 = vmul.f32 %v2128_v33, %v1293_v53  ;;  %v1344_v24 = vmul.f32 %v2135_v58, %v1297_v35  ;;  %v1338_v50 = vmul.f32 %v2132_v42, %v1273_v37  ;;  %v1345_v38 = vmul.f32 %v2141_v62, %v1301_v40 }
 0x573   :  { %1370 = vperm.xlu1 %1697, %v1335_v25   ;;  %1367 = vperm.xlu0 %1698, %v1334_v27   ;;  %v1277_v33 = vrot.slane %v1250_v26, %v2079_v6  ;;  %v1305_v51 = vrot.slane %v1251_v23, %v2068_v60  ;;  %v1309_v41 = vrot.slane %v1251_v23, %v2079_v6 }
 0x574   :  { %v1289_v52 = vrot.slane %v1251_v23, %v2053_v49  ;;  %v1313_v39 = vrot.slane %v1251_v23, %v2092_v57  ;;  %v1281_v60 = vrot.slane %v1250_v26, %v2092_v57  ;;  %v1317_v6 = vrot.slane %v1251_v23, %v2101_v36 }
 0x575   :  { %v1339_v45 = vmul.f32 %v2139_v43, %v1277_v33  ;;  %v1346_v58 = vmul.f32 %v2147_v63, %v1305_v51  ;;  %v1347_v42 = vmul.f32 %v2153_v1, %v1309_v41  ;;  %v1285_v49 = vrot.slane %v1250_v26, %v2101_v36 }
 0x576   :  { %v1342_v62 = vmul.f32 %v2145_v44, %v1289_v52  ;;  %v1348_v43 = vmul.f32 %v2159_v3, %v1313_v39  ;;  %v1340_v63 = vmul.f32 %v2151_v0, %v1281_v60  ;;  %v1349_v1 = vmul.f32 %v2163_v4, %v1317_v6 }
 0x577   :  { %1373 = vperm.xlu1 %1697, %v1336_v31   ;;  %1394 = vperm.xlu0 %1698, %v1343_v30   ;;  %v1341_v44 = vmul.f32 %v2157_v2, %v1285_v49 }
 0x57b   :  { %1376 = vperm.xlu1 %1697, %v1337_v29   ;;  %1397 = vperm.xlu0 %1698, %v1344_v24  }
 0x57f   :  { %1379 = vperm.xlu1 %1697, %v1338_v50   ;;  %1400 = vperm.xlu0 %1698, %v1345_v38  }
 0x583   :  { %1382 = vperm.xlu1 %1697, %v1339_v45   ;;  %1403 = vperm.xlu0 %1698, %v1346_v58  }
 0x587   :  { %1406 = vperm.xlu0 %1698, %v1347_v42   ;;  %1391 = vperm.xlu1 %1697, %v1342_v62  }
 0x58b   :  { %1409 = vperm.xlu0 %1698, %v1348_v43   ;;  %1385 = vperm.xlu1 %1697, %v1340_v63  }
 0x58f   :  { %1412 = vperm.xlu0 %1698, %v1349_v1   ;;  %1388 = vperm.xlu1 %1697, %v1341_v44  }
 0x5ee   :  { %v1371_v46 = vpop.permute.xlu1 %1370  ;;  %v1368_v57 = vpop.permute.xlu0 %1367 }
 0x5ef   :  { %v1421_v8 = vrot.slane %v1371_v46, %v2018_v56  ;;  %v1417_v4 = vrot.slane %v1368_v57, %v2018_v56 }
 0x5f1   :  { %v1478_v28 = vsel %vm934_vm3, %v1421_v8, %v1417_v4 }
 0x5f2   :  { %v1374_v47 = vpop.permute.xlu1 %1373  ;;  %v1395_v48 = vpop.permute.xlu0 %1394 }
 0x5f3   :  { %v1453_v2 = vrot.slane %v1395_v48, %v2018_v56  ;;  %v1425_v15 = vrot.slane %v1374_v47, %v2018_v56 }
 0x5f5   :  { %v1479_v21 = vsel %vm936_vm4, %v1425_v15, %v1478_v28 }
 0x5f6   :  { %v1377_v54 = vpop.permute.xlu1 %1376  ;;  %v1398_v3 = vpop.permute.xlu0 %1397 }
 0x5f7   :  { %v1457_v20 = vrot.slane %v1398_v3, %v2018_v56  ;;  %v1429_v9 = vrot.slane %v1377_v54, %v2018_v56 }
 0x5f9   :  { %v1480_v27 = vsel %vm938_vm5, %v1429_v9, %v1479_v21 }
 0x5fa   :  { %v1380_v55 = vpop.permute.xlu1 %1379  ;;  %v1401_v0 = vpop.permute.xlu0 %1400 }
 0x5fb   :  { %v1461_v10 = vrot.slane %v1401_v0, %v2018_v56  ;;  %v1433_v12 = vrot.slane %v1380_v55, %v2018_v56 }
 0x5fd   :  { %v1481_v53 = vsel %vm940_vm6, %v1433_v12, %v1480_v27 }
 0x5fe   :  { %v1383_v59 = vpop.permute.xlu1 %1382  ;;  %v1404_v5 = vpop.permute.xlu0 %1403 }
 0x5ff   :  { %v1465_v13 = vrot.slane %v1404_v5, %v2018_v56  ;;  %v1437_v26 = vrot.slane %v1383_v59, %v2018_v56 }
 0x601   :  { %v1482_v34 = vsel %vm942_vm7, %v1437_v26, %v1481_v53 }
 0x602   :  { %v1392_v7 = vpop.permute.xlu1 %1391  ;;  %v1407_v36 = vpop.permute.xlu0 %1406 }
 0x603   :  { %v1449_v17 = vrot.slane %v1392_v7, %v2018_v56  ;;  %v1469_v61 = vrot.slane %v1407_v36, %v2018_v56 }
 0x605   :  { %v1485_v11 = vsel %vm934_vm3, %v1453_v2, %v1449_v17 }
 0x606   :  { %v1486_v19 = vsel %vm936_vm4, %v1457_v20, %v1485_v11  ;;  %v1386_v14 = vpop.permute.xlu1 %1385  ;;  %v1410_v16 = vpop.permute.xlu0 %1409 }
 0x607   :  { %v1487_v18 = vsel %vm938_vm5, %v1461_v10, %v1486_v19  ;;  %v1441_v23 = vrot.slane %v1386_v14, %v2018_v56  ;;  %v1473_v25 = vrot.slane %v1410_v16, %v2018_v56 }
 0x608   :  { %v1488_v22 = vsel %vm940_vm6, %v1465_v13, %v1487_v18 }
 0x609   :  { %v1489_v32 = vsel %vm942_vm7, %v1469_v61, %v1488_v22  ;;  %v1483_v24 = vsel %vm944_vm8, %v1441_v23, %v1482_v34 }
 0x60a   :  { %v1389_v31 = vpop.permute.xlu1 %1388  ;;  %v1413_v30 = vpop.permute.xlu0 %1412  ;;  %v1490_v37 = vsel %vm944_vm8, %v1473_v25, %v1489_v32 }
 0x60b   :  { %v1445_v35 = vrot.slane %v1389_v31, %v2018_v56  ;;  %v1477_v29 = vrot.slane %v1413_v30, %v2018_v56 }
 0x60d   :  { %v1484_v40 = vsel %vm946_vm9, %v1445_v35, %v1483_v24  ;;  %v1491_v50 = vsel %vm946_vm9, %v1477_v29, %v1490_v37 }
 0x60e   :  { %1494 = vst.msk [vmem:[%s2277_s9] sm:$0xff] %vm957_vm10, %v1484_v40  ;;  %1495 = vst.msk [vmem:[%s2277_s9 + $0x8] sm:$0xff] %vm957_vm10, %v1491_v50 }

</bundles_post_ra>
